<compile_context>
chip_gen: v5e
topology: v5e:2x2
jax: 0.10.0
libtpu: 0.0.40
codegen_flags: <defaults>
</compile_context>

<pallas_src>
import functools

import jax
import jax.numpy as jnp
import numpy as np
from jax.experimental import pallas as pl
from jax.experimental.pallas import tpu as pltpu


def _round_up(x, m):
    return ((x + m - 1) // m) * m


def _vmem_budget_bytes():
    """Generation-aware scoped-VMEM budget: ~80 MiB on 128-MiB parts, ~40 MiB on v7x."""
    cap = None
    try:
        cap = getattr(pltpu.get_tpu_info(), "vmem_capacity_bytes", None)
    except Exception:
        cap = None
    if cap is not None and cap >= 100 * (1 << 20):   # v5e / v6e: 128 MiB physical VMEM
        return 80 * (1 << 20)
    return 40 * (1 << 20)                            # v7x (64 MiB physical) or unknown


def _downsample_conv_kernel(x_ref, w_ref, b_ref, o_ref, *, ws_out):
    # x_ref : (Th+1, 2, Ws_in, 2C) bf16, folded rows for this output-row tile (+1 halo row)
    #         x_ref[hs, ph, ws, pw*C + c] = x_pad[2*(row0+hs)+ph, 2*ws+pw, c]
    # w_ref : (9C, TN) bf16, im2col-ordered weights: row index = kh*3C + kw*C + c
    # b_ref : (1, TN)  f32
    # o_ref : (Th, Wo, TN)
    th, wo, tn = o_ref.shape
    c = x_ref.shape[-1] // 2

    # Build the (Th, Ws_out, 9C) im2col slab once per step (single VMEM copy pass).
    # Each piece is a leading-dim / prefix slice (plus one offset-1 column slice for
    # kw == 2); no per-dot strided slice+reshape relayouts.
    pieces = []
    for hs0, ph in ((0, 0), (0, 1), (1, 0)):                          # kh = 0, 1, 2
        pieces.append(x_ref[hs0:hs0 + th, ph, 0:ws_out, :])           # kw in {0, 1}
        pieces.append(x_ref[hs0:hs0 + th, ph, 1:1 + ws_out, 0:c])     # kw == 2
    slab = jnp.concatenate(pieces, axis=-1)                           # (Th, Ws_out, 9C)

    # One deep MXU contraction; reshape is free because Ws_out % 8 == 0.
    acc = jnp.dot(slab.reshape(th * ws_out, 9 * c), w_ref[...],
                  preferred_element_type=jnp.float32)                 # (Th*Ws_out, TN)
    acc = acc.reshape(th, ws_out, tn)

    # Drop the junk folded column(s) once at the end, add bias, store lane-dense.
    o_ref[...] = (acc[:, 0:wo, :] + b_ref[...]).astype(o_ref.dtype)


def _prepare_weights(weight_oihw, bias, cout_pad, compute_dtype):
    """Repack conv weights to the kernel's im2col order (hoist out of the hot path)."""
    cout, c, kh, kw = weight_oihw.shape
    # W9[kh*3C + kw*C + c, o] = weight[o, c, kh, kw]
    w9 = jnp.transpose(weight_oihw, (2, 3, 1, 0)).reshape(kh * kw * c, cout)
    w9 = jnp.pad(w9, ((0, 0), (0, cout_pad - cout))).astype(compute_dtype)
    if bias is None:
        b_row = jnp.zeros((1, cout_pad), jnp.float32)
    else:
        b_row = jnp.pad(bias.astype(jnp.float32), (0, cout_pad - cout)).reshape(1, cout_pad)
    return w9, b_row


def downsample2d_conv(x_nchw, weight_oihw, bias=None, *,
                      compute_dtype=jnp.bfloat16, out_dtype=None):
    """Equivalent to nn.Conv2d(C, Cout, kernel_size=3, stride=2, padding=1)(x)."""
    B, C, H, W = x_nchw.shape
    Cout, Cin, KH, KW = weight_oihw.shape
    assert Cin == C and (KH, KW) == (3, 3)
    padding, stride = 1, 2
    Ho = (H + 2 * padding - KH) // stride + 1
    Wo = (W + 2 * padding - KW) // stride + 1
    out_dtype = out_dtype or x_nchw.dtype
    cbytes = jnp.dtype(compute_dtype).itemsize
    obytes = jnp.dtype(out_dtype).itemsize

    # ---- output-channel tiling: lane-dense, full MXU width on v6e/v7x ----
    if Cout <= 128:
        Cout_pad, tn = 128, 128
    else:
        Cout_pad, tn = _round_up(Cout, 256), 256
    n_cout = Cout_pad // tn

    # ---- folded-width sizing: Ws_out multiple of 8 => free (M, 9C) reshapes ----
    Ws_out = max(_round_up(Wo, 8), 8)
    Ws_in = max((W + 2 * padding + 1) // 2, Ws_out + 1)   # >= Ws_out + 1 for the kw==2 column

    # ---- output-row tile Th: biggest that fits the generation-aware VMEM budget ----
    def step_vmem(th):
        xb = (th + 1) * 2 * Ws_in * 2 * C * cbytes         # activation block
        wb = 9 * C * tn * cbytes                           # weight block
        ob = th * Wo * tn * obytes                         # output block
        slab = th * Ws_out * 9 * C * cbytes                # im2col slab (+ concat pieces)
        acc = th * Ws_out * tn * 4                         # f32 matmul result
        tmp = th * Wo * tn * 4                             # sliced / bias temp before cast
        return 2 * (xb + wb + ob) + 2 * tn * 4 + 2 * slab + acc + tmp

    budget = _vmem_budget_bytes()
    th = max(1, min(Ho, 256))
    while th > 1 and step_vmem(th) > budget:
        th = (th + 1) // 2
    if B * n_cout == 1 and Ho >= 16:                       # v7x: give the 2 TCs a parallel axis
        th = min(th, -(-Ho // 2))
    n_h = -(-Ho // th)
    Ho_pad = n_h * th
    Hs_in = max((H + 2 * padding + 1) // 2, Ho_pad + 1)

    # ---- layout glue (no FLOPs): NCHW -> NHWC, zero-pad, fold stride-2 phases ----
    x = jnp.transpose(x_nchw, (0, 2, 3, 1))                                # (B, H, W, C)
    xp = jnp.pad(x, ((0, 0),
                     (padding, 2 * Hs_in - H - padding),
                     (padding, 2 * Ws_in - W - padding),
                     (0, 0)))
    x_f = xp.reshape(B, Hs_in, 2, Ws_in, 2 * C).astype(compute_dtype)      # row=2hs+ph, col=2ws+pw
    # 1-folded-row halo per output-row tile, materialized once ((Th+1)/Th bytes overhead).
    row_idx = (np.arange(n_h)[:, None] * th + np.arange(th + 1)[None, :]).reshape(-1)
    x_blocks = jnp.take(x_f, row_idx, axis=1).reshape(B, n_h, th + 1, 2, Ws_in, 2 * C)

    w9, b_row = _prepare_weights(weight_oihw, bias, Cout_pad, compute_dtype)

    # ---- grid order: do not re-stream the larger constant operand from HBM ----
    w_bytes = 9 * C * Cout_pad * cbytes
    act_bytes = B * n_h * (th + 1) * 2 * Ws_in * 2 * C * cbytes
    n_major = (B * n_h - 1) * w_bytes >= (n_cout - 1) * act_bytes
    if n_major:      # weights DMA'd once total; activations re-read n_cout times
        grid = (n_cout, B, n_h)
        ix_x = lambda n, b, i: (b, i, 0, 0, 0, 0)
        ix_w = lambda n, b, i: (0, n)
        ix_b = lambda n, b, i: (0, n)
        ix_o = lambda n, b, i: (b, i, 0, n)
    else:            # activations DMA'd once total; weights re-read B*n_h times
        grid = (B, n_h, n_cout)
        ix_x = lambda b, i, n: (b, i, 0, 0, 0, 0)
        ix_w = lambda b, i, n: (0, n)
        ix_b = lambda b, i, n: (0, n)
        ix_o = lambda b, i, n: (b, i, 0, n)

    kernel = functools.partial(_downsample_conv_kernel, ws_out=Ws_out)
    vmem_limit = int(min(max(budget, step_vmem(th) + (4 << 20)), 112 << 20))

    out_pad = pl.pallas_call(
        kernel,
        out_shape=jax.ShapeDtypeStruct((B, Ho_pad, Wo, Cout_pad), out_dtype),
        grid_spec=pltpu.PrefetchScalarGridSpec(
            num_scalar_prefetch=0,
            grid=grid,
            in_specs=[
                pl.BlockSpec((None, None, th + 1, 2, Ws_in, 2 * C), ix_x),
                pl.BlockSpec((9 * C, tn), ix_w),
                pl.BlockSpec((1, tn), ix_b),
            ],
            out_specs=pl.BlockSpec((None, th, Wo, tn), ix_o),
        ),
        compiler_params=pltpu.CompilerParams(
            dimension_semantics=("parallel", "parallel", "parallel"),
            vmem_limit_bytes=vmem_limit,
        ),
    )(x_blocks, w9, b_row)

    out = out_pad[:, :Ho, :, :Cout]                  # strip row / lane padding
    return jnp.transpose(out, (0, 3, 1, 2))          # back to NCHW


if __name__ == "__main__":
    # Downsample2D(channels=4, use_conv=True, out_channels=8, padding=1)
    B, C, H, W = 2, 4, 16, 16
    Cout, KH, KW = 8, 3, 3

    key = jax.random.PRNGKey(0)
    kx, kw_, kb = jax.random.split(key, 3)
    x = jax.random.normal(kx, (B, C, H, W), dtype=jnp.float32)
    weight = jax.random.normal(kw_, (Cout, C, KH, KW), dtype=jnp.float32) * 0.1
    bias = jax.random.normal(kb, (Cout,), dtype=jnp.float32) * 0.1

    y = downsample2d_conv(x, weight, bias)
    y = jax.block_until_ready(y)

    # Reference on the same bf16-rounded operands (kernel computes bf16 x bf16 with f32
    # accumulation), matching nn.Conv2d(kernel_size=3, stride=2, padding=1) semantics.
    xq = x.astype(jnp.bfloat16).astype(jnp.float32)
    wq = weight.astype(jnp.bfloat16).astype(jnp.float32)
    ref = jax.lax.conv_general_dilated(
        xq, wq, window_strides=(2, 2), padding=((1, 1), (1, 1)),
        dimension_numbers=("NCHW", "OIHW", "NCHW"),
        precision=jax.lax.Precision.HIGHEST,
    ) + bias.reshape(1, -1, 1, 1)

    assert y.shape == (B, Cout, H // 2, W // 2), y.shape
    max_err = float(jnp.max(jnp.abs(y - ref)))
    assert jnp.allclose(y, ref, atol=2e-3, rtol=2e-3), max_err
    print("KERNEL_OK")
</pallas_src>

<mosaic_0001>
module attributes {stable_mosaic.version = 11 : i64} {
  func.func @_downsample_conv_kernel(%arg0: i32, %arg1: i32, %arg2: i32, %arg3: memref<1x1x9x2x9x8xbf16, #tpu.memory_space<vmem>>, %arg4: memref<36x128xbf16, #tpu.memory_space<vmem>>, %arg5: memref<1x128xf32, #tpu.memory_space<vmem>>, %arg6: memref<1x8x8x128xf32, #tpu.memory_space<vmem>>) attributes {dimension_semantics = [#tpu.dimension_semantics<parallel>, #tpu.dimension_semantics<parallel>, #tpu.dimension_semantics<parallel>], iteration_bounds = array<i64: 1, 2, 1>, scalar_prefetch = 0 : i64, scratch_operands = 0 : i64, tpu.core_type = #tpu.core_type<tc>, window_params = [{transform_indices = @transform_0, window_bounds = array<i64: 1, 1, 9, 2, 9, 8>}, {transform_indices = @transform_1, window_bounds = array<i64: 36, 128>}, {transform_indices = @transform_2, window_bounds = array<i64: 1, 128>}, {transform_indices = @transform_3, window_bounds = array<i64: 1, 8, 8, 128>}]} {
    %c0 = arith.constant 0 : index
    %c0_0 = arith.constant 0 : index
    %c0_1 = arith.constant 0 : index
    %c0_2 = arith.constant 0 : index
    %c0_3 = arith.constant 0 : index
    %c0_4 = arith.constant 0 : index
    %0 = vector.load %arg3[%c0, %c0_0, %c0_1, %c0_2, %c0_3, %c0_4] : memref<1x1x9x2x9x8xbf16, #tpu.memory_space<vmem>>, vector<1x1x8x1x8x8xbf16>
    %1 = vector.shape_cast %0 : vector<1x1x8x1x8x8xbf16> to vector<8x8x8xbf16>
    %c0_5 = arith.constant 0 : index
    %c0_6 = arith.constant 0 : index
    %c0_7 = arith.constant 0 : index
    %c0_8 = arith.constant 0 : index
    %c1 = arith.constant 1 : index
    %c0_9 = arith.constant 0 : index
    %2 = vector.load %arg3[%c0_5, %c0_6, %c0_7, %c0_8, %c1, %c0_9] : memref<1x1x9x2x9x8xbf16, #tpu.memory_space<vmem>>, vector<1x1x8x1x8x4xbf16>
    %3 = vector.shape_cast %2 : vector<1x1x8x1x8x4xbf16> to vector<8x8x4xbf16>
    %c0_10 = arith.constant 0 : index
    %c0_11 = arith.constant 0 : index
    %c0_12 = arith.constant 0 : index
    %c1_13 = arith.constant 1 : index
    %c0_14 = arith.constant 0 : index
    %c0_15 = arith.constant 0 : index
    %4 = vector.load %arg3[%c0_10, %c0_11, %c0_12, %c1_13, %c0_14, %c0_15] : memref<1x1x9x2x9x8xbf16, #tpu.memory_space<vmem>>, vector<1x1x8x1x8x8xbf16>
    %5 = vector.shape_cast %4 : vector<1x1x8x1x8x8xbf16> to vector<8x8x8xbf16>
    %c0_16 = arith.constant 0 : index
    %c0_17 = arith.constant 0 : index
    %c0_18 = arith.constant 0 : index
    %c1_19 = arith.constant 1 : index
    %c1_20 = arith.constant 1 : index
    %c0_21 = arith.constant 0 : index
    %6 = vector.load %arg3[%c0_16, %c0_17, %c0_18, %c1_19, %c1_20, %c0_21] : memref<1x1x9x2x9x8xbf16, #tpu.memory_space<vmem>>, vector<1x1x8x1x8x4xbf16>
    %7 = vector.shape_cast %6 : vector<1x1x8x1x8x4xbf16> to vector<8x8x4xbf16>
    %c0_22 = arith.constant 0 : index
    %c0_23 = arith.constant 0 : index
    %c1_24 = arith.constant 1 : index
    %c0_25 = arith.constant 0 : index
    %c0_26 = arith.constant 0 : index
    %c0_27 = arith.constant 0 : index
    %8 = vector.load %arg3[%c0_22, %c0_23, %c1_24, %c0_25, %c0_26, %c0_27] : memref<1x1x9x2x9x8xbf16, #tpu.memory_space<vmem>>, vector<1x1x8x1x8x8xbf16>
    %9 = vector.shape_cast %8 : vector<1x1x8x1x8x8xbf16> to vector<8x8x8xbf16>
    %c0_28 = arith.constant 0 : index
    %c0_29 = arith.constant 0 : index
    %c1_30 = arith.constant 1 : index
    %c0_31 = arith.constant 0 : index
    %c1_32 = arith.constant 1 : index
    %c0_33 = arith.constant 0 : index
    %10 = vector.load %arg3[%c0_28, %c0_29, %c1_30, %c0_31, %c1_32, %c0_33] : memref<1x1x9x2x9x8xbf16, #tpu.memory_space<vmem>>, vector<1x1x8x1x8x4xbf16>
    %11 = vector.shape_cast %10 : vector<1x1x8x1x8x4xbf16> to vector<8x8x4xbf16>
    %12 = tpu.concatenate %1, %3, %5, %7, %9, %11 in 2 : vector<8x8x8xbf16>, vector<8x8x4xbf16>, vector<8x8x8xbf16>, vector<8x8x4xbf16>, vector<8x8x8xbf16>, vector<8x8x4xbf16> -> vector<8x8x36xbf16>
    %13 = vector.shape_cast %12 : vector<8x8x36xbf16> to vector<64x36xbf16>
    %c0_34 = arith.constant 0 : index
    %c0_35 = arith.constant 0 : index
    %14 = vector.load %arg4[%c0_34, %c0_35] : memref<36x128xbf16, #tpu.memory_space<vmem>>, vector<36x128xbf16>
    %cst = arith.constant dense<0.000000e+00> : vector<64x128xf32>
    %15 = tpu.matmul %13, %14, %cst {dimension_numbers = #tpu.dot_dimension_numbers<[1], [0], [0], [1], [0, 0, 1, 1], [], []>} : vector<64x36xbf16>, vector<36x128xbf16>, vector<64x128xf32> -> vector<64x128xf32>
    %16 = vector.shape_cast %15 : vector<64x128xf32> to vector<8x8x128xf32>
    %c0_36 = arith.constant 0 : index
    %c0_37 = arith.constant 0 : index
    %17 = vector.load %arg5[%c0_36, %c0_37] : memref<1x128xf32, #tpu.memory_space<vmem>>, vector<1x128xf32>
    %18 = vector.shape_cast %17 : vector<1x128xf32> to vector<1x1x128xf32>
    %19 = vector.broadcast %18 : vector<1x1x128xf32> to vector<8x8x128xf32>
    %20 = arith.addf %16, %19 : vector<8x8x128xf32>
    %c0_38 = arith.constant 0 : index
    %c0_39 = arith.constant 0 : index
    %c0_40 = arith.constant 0 : index
    %c0_41 = arith.constant 0 : index
    %21 = vector.load %arg6[%c0_38, %c0_39, %c0_40, %c0_41] : memref<1x8x8x128xf32, #tpu.memory_space<vmem>>, vector<1x8x8x128xf32>
    %22 = vector.shape_cast %21 : vector<1x8x8x128xf32> to vector<8x8x128xf32>
    %23 = vector.shape_cast %20 : vector<8x8x128xf32> to vector<1x8x8x128xf32>
    tpu.vector_store %arg6[%c0_38, %c0_39, %c0_40, %c0_41], %23 {strides = array<i32>} : memref<1x8x8x128xf32, #tpu.memory_space<vmem>>, vector<1x8x8x128xf32>,
    return
  }
  func.func @transform_0(%arg0: i32, %arg1: i32, %arg2: i32) -> (i32, i32, i32, i32, i32, i32) {
    %c0_i32 = arith.constant 0 : i32
    %c0_i32_0 = arith.constant 0 : i32
    %c0_i32_1 = arith.constant 0 : i32
    %c0_i32_2 = arith.constant 0 : i32
    %c0_i32_3 = arith.constant 0 : i32
    return %arg1, %arg2, %c0_i32, %c0_i32_0, %c0_i32_1, %c0_i32_2 : i32, i32, i32, i32, i32, i32
  }
  func.func @transform_1(%arg0: i32, %arg1: i32, %arg2: i32) -> (i32, i32) {
    %c0_i32 = arith.constant 0 : i32
    %c0_i32_0 = arith.constant 0 : i32
    return %c0_i32, %arg0 : i32, i32
  }
  func.func @transform_2(%arg0: i32, %arg1: i32, %arg2: i32) -> (i32, i32) {
    %c0_i32 = arith.constant 0 : i32
    %c0_i32_0 = arith.constant 0 : i32
    return %c0_i32, %arg0 : i32, i32
  }
  func.func @transform_3(%arg0: i32, %arg1: i32, %arg2: i32) -> (i32, i32, i32, i32) {
    %c0_i32 = arith.constant 0 : i32
    %c0_i32_0 = arith.constant 0 : i32
    return %arg1, %arg2, %c0_i32, %arg0 : i32, i32, i32, i32
  }
}

</mosaic_0001>

<bundles_post_ra>
// kernel: tpu_custom_call.1
= control target key start
LH: loop header
LB: loop body
LE: loop exit
PB: predicated region body
PF: predicated region fallthrough
CT: control target
= control target key end

     0   :  { %8 = vsyncpa [#allocation3], 0  ;;  %s1542_s0 = inlined_call_operand.vmem [shape: bf16[2,1,9,2,9,8], index: 0, kind: input, shape index: {}]   ;;  %s1543_s1 = inlined_call_operand.vmem [shape: bf16[36,128], index: 1, kind: input, shape index: {}]   ;;  %s1544_s2 = inlined_call_operand.vmem [shape: f32[1,128], index: 2, kind: input, shape index: {}]   ;;  %s1545_s3 = inlined_call_operand.hbm [shape: f32[2,8,8,128], index: 3, kind: output, shape index: {}]  }
   0x1   :  { %10 = vsyncpa [#allocation3 + $0x1], 0  ;;  %s1283_s12 = smov 0   ;;  %s1285_s13 = smov 0  }
   0x2   :  { %s1287_s14 = smov 0   ;;  %s1289_s15 = smov 0  }
   0x3   :  { %s1291_s16 = smov 0   ;;  %s1293_s17 = smov 0  }
   0x4 LB: > { %s1004_s18 = sadd.s32 4294967295, %s1255_s17   ;;  %s1005_s19 = sadd.s32 4294967294, %s1255_s17   ;;  %s1255_s17 = sphi %s1293_s17, %s16_s17   ;;  %s1251_s16 = sphi %s1291_s16, %s1552_s16   ;;  %s1247_s15 = sphi %s1289_s15, %s1551_s15   ;;  %s1243_s14 = sphi %s1287_s14, %s1550_s14   ;;  %s1239_s13 = sphi %s1285_s13, %s1549_s13   ;;  %s1235_s12 = sphi %s1283_s12, %s1548_s12  }
   0x5   : > { %s31_s20 = sadd.s32 1, %s1251_s16  ;;  %s126_s21 = sadd.s32 1, %s1243_s14 }
   0x6   : > { %p33_p0 = scmp.ge.s32.totalorder %s31_s20, 2  ;;  %p136_p1 = scmp.ne.s32.totalorder %s1243_s14, %s1239_s13 }
   0x7   : > { %p137_p2 = scmp.eq.s32.totalorder %s1004_s18, 1  ;;  %p142_p3 = scmp.ne.s32.totalorder %s1239_s13, %s1235_s12 }
   0x8   : > { %s1554_s20 = smov (%p33_p0, %s31_s20), 0  ;;  %p143_p5 = scmp.eq.s32.totalorder %s1005_s19, 1 }
   0x9   : > { %p1323_p4 = por %p137_p2, %p136_p1  ;;  %s119_s23 = ssub.s32 %s1251_s16, %s1554_s20 }
   0xa   : > { %p1010_p6 = scmp.ge.s32.totalorder %s1255_s17, 1  ;;  %p124_p7 = scmp.eq.s32.totalorder %s119_s23, 0 }
   0xb   : > { %p1330_p8 = por %p143_p5, %p142_p3  ;;  %p186_p9 = scmp.lt.s32.totalorder %s1255_s17, 3 }
   0xc   : > { %s1336_s25 = scalar_select %p124_p7, %s1243_s14, %s126_s21  }
   0xd   : > { %p187_p10 = pnand %p1010_p6, %p186_p9 }
   0xe   : > { %p221_p11 = scmp.lt.s32.totalorder (!%p187_p10), %s1247_s15, 1  ;;  %s1257_s4 = smov (!%p187_p10), 12  }
   0xf   : > { %190 = sbr.rel (%p187_p10) target bundleno = 394 (0x18a), region = 32  ;;  %s1258_s5 = smov (!%p187_p10), 8  }
  0x10   : > { %s1259_s6 = smov (!%p187_p10), 20   ;;  %s1260_s7 = smov (!%p187_p10), 24  }
  0x11   : > { %s1261_s8 = smov (!%p187_p10), 32   ;;  %s218_s23 = sand.u32 (!%p187_p10), 1, %s1239_s13  }
  0x12   : > { %s873_s10 = scalar_lea.sflag (!%p187_p10), [#allocation3], %s218_s23  ;;  %s1197_s21 = scalar_lea.hbm (!%p187_p10), %s1545_s3, 128 }
  0x14   : > { %s222_s26 = scalar_select %p221_p11, %s1247_s15, 1  ;;  %vm819_vm0 = vcmask 1041408   ;;  %vm673_vm1 = vcmask 64512   ;;  %vm698_vm2 = vcmask 97280   ;;  %vm715_vm3 = vcmask 162816  }
  0x15   : > { %vm732_vm4 = vcmask 195584   ;;  %vm749_vm5 = vcmask 261120   ;;  %vm806_vm6 = vcmask 293888  }
  0x16   : > { %s1114_s27 = smul.u32 144, %s222_s26  ;;  %s1011_s26 = sshll.u32 %s218_s23, 6 }
  0x17   : > { %s220_s29 = scalar_lea.vmem [#allocation2], %s1011_s26 }
  0x18   : > { %s1343_s30 = scalar_lea.vmem %s1542_s0, %s1114_s27 }
  0x19   : > { %v1020_v0 = vld [vmem:[%s1343_s30 + $0x78] sm:$0xf]  ;;  %v1019_v1 = vld [vmem:[%s1343_s30 + $0x68] sm:$0xf]  ;;  %v1071_v4 = vld [vmem:[%s1343_s30 + $0x60] sm:$0xf] }
  0x1a   : > { %v416_v2 = vunpack.c.l.b16 %v1020_v0  ;;  %v415_v3 = vunpack.c.l.b16 %v1019_v1  ;;  %v1100_v5 = vld [vmem:[%s1343_s30 + $0x60] sm:$0x10]  ;;  %v1063_v7 = vld [vmem:[%s1343_s30 + $0x40] sm:$0xf]  ;;  %v1075_v9 = vld [vmem:[%s1343_s30 + $0x70] sm:$0xf] }
  0x1b   : > { %v1072_v6 = vor.u32 %v1100_v5, %v1071_v4  ;;  %v1098_v8 = vld [vmem:[%s1343_s30 + $0x40] sm:$0x10]  ;;  %v1101_v13 = vld [vmem:[%s1343_s30 + $0x70] sm:$0x10]  ;;  %v1067_v14 = vld [vmem:[%s1343_s30 + $0x50] sm:$0xf] }
  0x1c   : > { %v424_v10 = vpack.c.b16 %v416_v2, %v416_v2  ;;  %v423_v11 = vpack.c.b16 %v415_v3, %v415_v3  ;;  %v1064_v12 = vor.u32 %v1098_v8, %v1063_v7  ;;  %v1099_v15 = vld [vmem:[%s1343_s30 + $0x50] sm:$0x10]  ;;  %v1076_v18 = vor.u32 %v1101_v13, %v1075_v9  ;;  %v1017_v19 = vld [vmem:[%s1343_s30 + $0x48] sm:$0xf]  ;;  %v1025_v20 = vld [vmem:[%s1343_s30 + $0x4c] sm:$0x1] }
  0x1d   : > { %v372_v16 = vshrl.u32 %v1072_v6, 16  ;;  %v374_v17 = vshll.u32 %v1072_v6, 16  ;;  %v1027_v21 = vld [vmem:[%s1343_s30 + $0x6c] sm:$0x1]  ;;  %v1068_v24 = vor.u32 %v1099_v15, %v1067_v14  ;;  %v413_v25 = vunpack.c.l.b16 %v1017_v19  ;;  %v1018_v28 = vld [vmem:[%s1343_s30 + $0x58] sm:$0xf] }
  0x1e   : > { %439 = vrot.lane.b32.xlu1 %v424_v10, %s1257_s4  ;;  %437 = vrot.lane.b32.xlu0 %v423_v11, %s1257_s4  ;;  %v358_v22 = vshrl.u32 %v1064_v12, 16  ;;  %v360_v23 = vshll.u32 %v1064_v12, 16  ;;  %v453_v27 = vunpack.c.l.b16 %v1025_v20  ;;  %v1026_v31 = vld [vmem:[%s1343_s30 + $0x5c] sm:$0x1]  ;;  %v455_v33 = vunpack.c.l.b16 %v1027_v21  ;;  %v1041_v63 = vld [vmem:[%s1343_s30 + $0x54] sm:$0x1] }
  0x1f   : > { %v376_v26 = vrot.slane %v374_v17, 1  ;;  %v421_v30 = vpack.c.b16 %v413_v25, %v413_v25  ;;  %v1028_v32 = vld [vmem:[%s1343_s30 + $0x7c] sm:$0x1]  ;;  %v381_v34 = vshll.u32 %v1076_v18, 16  ;;  %v367_v35 = vshll.u32 %v1068_v24, 16 }
  0x20   : > { %v362_v29 = vrot.slane %v360_v23, 1  ;;  %v461_v38 = vpack.c.b16 %v453_v27, %v413_v25  ;;  %v414_v39 = vunpack.c.l.b16 %v1018_v28  ;;  %v454_v40 = vunpack.c.l.b16 %v1026_v31  ;;  %v1033_v1 = vld [vmem:[%s1343_s30 + $0x50] sm:$0xf]  ;;  %v1034_v6 = vld [vmem:[%s1343_s30 + $0x60] sm:$0xf] }
  0x21   : > { %v377_v36 = vor.u32 %v376_v26, %v372_v16  ;;  %433 = vrot.lane.b32.xlu2 %v421_v30, %s1257_s4  ;;  %v456_v41 = vunpack.c.l.b16 %v1028_v32  ;;  %v463_v42 = vpack.c.b16 %v455_v33, %v415_v3  ;;  %v379_v43 = vshrl.u32 %v1076_v18, 16  ;;  %v1042_v7 = vld [vmem:[%s1343_s30 + $0x64] sm:$0x1]  ;;  %v1035_v13 = vld [vmem:[%s1343_s30 + $0x70] sm:$0xf] }
  0x22   : > { %v363_v37 = vor.u32 %v362_v29, %v358_v22  ;;  %v383_v44 = vrot.slane %v381_v34, 1  ;;  %v365_v45 = vshrl.u32 %v1068_v24, 16  ;;  %v369_v46 = vrot.slane %v367_v35, 1  ;;  %v1044_v9 = vld [vmem:[%s1343_s30 + $0x84] sm:$0x1] }
  0x23   : > { %v462_v47 = vpack.c.b16 %v454_v40, %v414_v39  ;;  %v422_v48 = vpack.c.b16 %v414_v39, %v414_v39  ;;  %v496_v49 = vshll.u32 %v461_v38, 16  ;;  %v464_v50 = vpack.c.b16 %v456_v41, %v416_v2  ;;  %v1043_v14 = vld [vmem:[%s1343_s30 + $0x74] sm:$0x1]  ;;  %v1036_v16 = vld [vmem:[%s1343_s30 + $0x80] sm:$0xf] }
  0x24   : > { %v384_v51 = vor.u32 %v383_v44, %v379_v43  ;;  %v510_v52 = vshll.u32 %v463_v42, 16  ;;  %v370_v53 = vor.u32 %v369_v46, %v365_v45  ;;  %v494_v55 = vshrl.u32 %v461_v38, 16  ;;  %v1047_v31 = vld [vmem:[%s1343_s30] sm:$0xf]  ;;  %v1094_v32 = vld [vmem:[%s1343_s30] sm:$0x10] }
  0x25   : > { %v503_v54 = vshll.u32 %v462_v47, 16  ;;  %v498_v56 = vrot.slane %v496_v49, 1  ;;  %v508_v57 = vshrl.u32 %v463_v42, 16  ;;  %v501_v59 = vshrl.u32 %v462_v47, 16  ;;  %v1096_v38 = vld [vmem:[%s1343_s30 + $0x20] sm:$0x10] }
  0x26   : > { %397 = vrot.lane.b32.xlu1 %v377_v36, %s1258_s5  ;;  %393 = vrot.lane.b32.xlu0 %v363_v37, %s1258_s5  ;;  %v512_v58 = vrot.slane %v510_v52, 1  ;;  %v517_v62 = vshll.u32 %v464_v50, 16  ;;  %v589_v3 = vunpack.c.l.b16 %v1041_v63  ;;  %v515_v4 = vshrl.u32 %v464_v50, 16  ;;  %v1055_v37 = vld [vmem:[%s1343_s30 + $0x20] sm:$0xf] }
  0x27   : > { %v505_v60 = vrot.slane %v503_v54, 1  ;;  %v499_v61 = vor.u32 %v498_v56, %v494_v55  ;;  %v549_v8 = vunpack.c.l.b16 %v1033_v1  ;;  %v550_v10 = vunpack.c.l.b16 %v1034_v6  ;;  %v1051_v42 = vld [vmem:[%s1343_s30 + $0x10] sm:$0xf]  ;;  %v1095_v43 = vld [vmem:[%s1343_s30 + $0x10] sm:$0x10] }
  0x28   : > { %v513_v0 = vor.u32 %v512_v58, %v508_v57  ;;  %v519_v5 = vrot.slane %v517_v62, 1  ;;  %v590_v15 = vunpack.c.l.b16 %v1042_v7  ;;  %v592_v17 = vunpack.c.l.b16 %v1044_v9  ;;  %v1059_v52 = vld [vmem:[%s1343_s30 + $0x30] sm:$0xf] }
  0x29   : > { %435 = vrot.lane.b32.xlu2 %v422_v48, %s1257_s4  ;;  %v506_v2 = vor.u32 %v505_v60, %v501_v59  ;;  %v597_v11 = vpack.c.b16 %v589_v3, %v549_v8  ;;  %v551_v18 = vunpack.c.l.b16 %v1035_v13  ;;  %v591_v19 = vunpack.c.l.b16 %v1043_v14 }
  0x2a   : > { %v520_v12 = vor.u32 %v519_v5, %v515_v4  ;;  %v558_v20 = vpack.c.b16 %v550_v10, %v550_v10  ;;  %v557_v21 = vpack.c.b16 %v549_v8, %v549_v8  ;;  %v598_v23 = vpack.c.b16 %v590_v15, %v550_v10  ;;  %v1013_v4 = vld [vmem:[%s1343_s30 + $0x8] sm:$0xf]  ;;  %v1014_v8 = vld [vmem:[%s1343_s30 + $0x18] sm:$0xf] }
  0x2b   : > { %v632_v22 = vshll.u32 %v597_v11, 16  ;;  %v552_v24 = vunpack.c.l.b16 %v1036_v16  ;;  %v599_v26 = vpack.c.b16 %v591_v19, %v551_v18  ;;  %v630_v27 = vshrl.u32 %v597_v11, 16  ;;  %v1023_v19 = vld [vmem:[%s1343_s30 + $0x2c] sm:$0x1] }
  0x2c   : > { %v559_v29 = vpack.c.b16 %v551_v18, %v551_v18  ;;  %v639_v30 = vshll.u32 %v598_v23, 16  ;;  %v637_v39 = vshrl.u32 %v598_v23, 16  ;;  %v1048_v41 = vor.u32 %v1094_v32, %v1047_v31  ;;  %v1015_v18 = vld [vmem:[%s1343_s30 + $0x28] sm:$0xf]  ;;  %v1016_v23 = vld [vmem:[%s1343_s30 + $0x38] sm:$0xf] }
  0x2d   : > { %v600_v25 = vpack.c.b16 %v592_v17, %v552_v24  ;;  %v634_v28 = vrot.slane %v632_v22, 1  ;;  %v560_v33 = vpack.c.b16 %v552_v24, %v552_v24  ;;  %v646_v35 = vshll.u32 %v599_v26, 16  ;;  %v1024_v17 = vld [vmem:[%s1343_s30 + $0x3c] sm:$0x1] }
  0x2e   : > { %399 = vrot.lane.b32.xlu1 %v384_v51, %s1258_s5  ;;  %395 = vrot.lane.b32.xlu0 %v370_v53, %s1258_s5  ;;  %v641_v40 = vrot.slane %v639_v30, 1  ;;  %v644_v46 = vshrl.u32 %v599_v26, 16  ;;  %v1056_v48 = vor.u32 %v1096_v38, %v1055_v37  ;;  %v1052_v49 = vor.u32 %v1095_v43, %v1051_v42  ;;  %v1097_v53 = vld [vmem:[%s1343_s30 + $0x30] sm:$0x10] }
  0x2f   : > { %v653_v34 = vshll.u32 %v600_v25, 16  ;;  %v635_v36 = vor.u32 %v634_v28, %v630_v27  ;;  %v651_v44 = vshrl.u32 %v600_v25, 16  ;;  %v648_v47 = vrot.slane %v646_v35, 1 }
  0x30   : > { %v642_v50 = vor.u32 %v641_v40, %v637_v39  ;;  %v332_v51 = vshll.u32 %v1048_v41, 16  ;;  %v346_v56 = vshll.u32 %v1056_v48, 16  ;;  %v339_v57 = vshll.u32 %v1052_v49, 16 }
  0x31   : > { %529 = vrot.lane.b32.xlu2 %v499_v61, %s1259_s6  ;;  %v655_v45 = vrot.slane %v653_v34, 1  ;;  %v649_v55 = vor.u32 %v648_v47, %v644_v46  ;;  %v330_v58 = vshrl.u32 %v1048_v41, 16  ;;  %v1060_v60 = vor.u32 %v1097_v53, %v1059_v52  ;;  %v1038_v46 = vld [vmem:[%s1343_s30 + $0x24] sm:$0x1]  ;;  %v1029_v47 = vld [vmem:[%s1343_s30 + $0x10] sm:$0xf] }
  0x32   : > { %v334_v59 = vrot.slane %v332_v51, 1  ;;  %v344_v61 = vshrl.u32 %v1056_v48, 16  ;;  %v348_v62 = vrot.slane %v346_v56, 1  ;;  %v337_v63 = vshrl.u32 %v1052_v49, 16  ;;  %v1037_v48 = vld [vmem:[%s1343_s30 + $0x14] sm:$0x1] }
  0x33   : > { %v656_v54 = vor.u32 %v655_v45, %v651_v44  ;;  %v353_v3 = vshll.u32 %v1060_v60, 16  ;;  %v351_v9 = vshrl.u32 %v1060_v60, 16  ;;  %v409_v11 = vunpack.c.l.b16 %v1013_v4  ;;  %v1030_v49 = vld [vmem:[%s1343_s30 + $0x20] sm:$0xf]  ;;  %v1031_v53 = vld [vmem:[%s1343_s30 + $0x30] sm:$0xf] }
  0x34   : > { %v335_v1 = vor.u32 %v334_v59, %v330_v58  ;;  %v349_v6 = vor.u32 %v348_v62, %v344_v61  ;;  %v410_v13 = vunpack.c.l.b16 %v1014_v8  ;;  %v452_v24 = vunpack.c.l.b16 %v1024_v17 }
  0x35   : > { %v355_v10 = vrot.slane %v353_v3, 1  ;;  %v411_v25 = vunpack.c.l.b16 %v1015_v18  ;;  %v451_v26 = vunpack.c.l.b16 %v1023_v19  ;;  %v412_v28 = vunpack.c.l.b16 %v1016_v23 }
  0x36   : > { %533 = vrot.lane.b32.xlu1 %v513_v0, %s1259_s6  ;;  %531 = vrot.lane.b32.xlu0 %v506_v2, %s1259_s6  ;;  %v341_v0 = vrot.slane %v339_v57, 1  ;;  %v1021_v2 = vld [vmem:[%s1343_s30 + $0xc] sm:$0x1]  ;;  %v546_v56 = vunpack.c.l.b16 %v1030_v49  ;;  %v1039_v57 = vld [vmem:[%s1343_s30 + $0x34] sm:$0x1]  ;;  %v547_v58 = vunpack.c.l.b16 %v1031_v53 }
  0x37   : > { %v449_v5 = vunpack.c.l.b16 %v1021_v2  ;;  %v356_v15 = vor.u32 %v355_v10, %v351_v9  ;;  %v460_v31 = vpack.c.b16 %v452_v24, %v412_v28  ;;  %v459_v32 = vpack.c.b16 %v451_v26, %v411_v25 }
  0x38   : > { %v342_v7 = vor.u32 %v341_v0, %v337_v63  ;;  %v587_v62 = vunpack.c.l.b16 %v1039_v57  ;;  %v1032_v63 = vld [vmem:[%s1343_s30 + $0x40] sm:$0xf]  ;;  %v1040_v0 = vld [vmem:[%s1343_s30 + $0x44] sm:$0x1]  ;;  %v554_v2 = vpack.c.b16 %v546_v56, %v546_v56  ;;  %v246_v57 = vld [vmem:[%s1343_s30 + $0x70] sm:$0xf] }
  0x39   : > { %535 = vrot.lane.b32.xlu2 %v520_v12, %s1259_s6  ;;  %v1022_v12 = vld [vmem:[%s1343_s30 + $0x1c] sm:$0x1]  ;;  %v457_v14 = vpack.c.b16 %v449_v5, %v409_v11  ;;  %v489_v37 = vshll.u32 %v460_v31, 16  ;;  %v482_v38 = vshll.u32 %v459_v32, 16  ;;  %v487_v41 = vshrl.u32 %v460_v31, 16 }
  0x3a   : > { %v450_v16 = vunpack.c.l.b16 %v1022_v12  ;;  %v480_v43 = vshrl.u32 %v459_v32, 16  ;;  %v548_v5 = vunpack.c.l.b16 %v1032_v63 }
  0x3b   : > { %v468_v22 = vshll.u32 %v457_v14, 16  ;;  %v491_v42 = vrot.slane %v489_v37, 1  ;;  %v484_v44 = vrot.slane %v482_v38, 1  ;;  %v1102_v37 = vld [vmem:[%s1543_s1] sm:$0xff] }
  0x3c   : > { %v458_v27 = vpack.c.b16 %v450_v16, %v410_v13 }
  0x3d   : > { %v470_v30 = vrot.slane %v468_v22, 1  ;;  %v492_v51 = vor.u32 %v491_v42, %v487_v41  ;;  %v485_v52 = vor.u32 %v484_v44, %v480_v43  ;;  %v244_v44 = vld [vmem:[%s1343_s30 + $0x50] sm:$0xf] }
  0x3e   : > { %571 = vrot.lane.b32.xlu1 %v558_v20, %s1260_s7  ;;  %569 = vrot.lane.b32.xlu0 %v557_v21, %s1260_s7  ;;  %v418_v20 = vpack.c.b16 %v410_v13, %v410_v13  ;;  %v417_v21 = vpack.c.b16 %v409_v11, %v409_v11  ;;  %v475_v34 = vshll.u32 %v458_v27, 16  ;;  %v473_v39 = vshrl.u32 %v458_v27, 16  ;;  %v770_v27 = vld [vmem:[%s1543_s1 + $0x10] sm:$0x3] }
  0x3f   : > { %v556_v13 = vpack.c.b16 %v548_v5, %v548_v5 }
  0x40   : > { %v477_v40 = vrot.slane %v475_v34, 1 }
  0x41   : > { %573 = vrot.lane.b32.xlu2 %v559_v29, %s1260_s7  ;;  %v466_v29 = vshrl.u32 %v457_v14, 16 }
  0x42   : > { %v478_v45 = vor.u32 %v477_v40, %v473_v39 }
  0x43   : > { %v471_v35 = vor.u32 %v470_v30, %v466_v29 }
  0x46   : > { %665 = vrot.lane.b32.xlu1 %v635_v36, %s1261_s8  ;;  %575 = vrot.lane.b32.xlu0 %v560_v33, %s1260_s7  ;;  %v419_v33 = vpack.c.b16 %v411_v25, %v411_v25  ;;  %v420_v36 = vpack.c.b16 %v412_v28, %v412_v28  ;;  %v800_v28 = vunpack.c.l.b16 %v770_v27 }
  0x48   : > { %v803_v31 = vpack.c.b16 %v800_v28, %v800_v28  ;;  %v242_v28 = vld [vmem:[%s1343_s30 + $0x30] sm:$0xf] }
  0x49   : > { %667 = vrot.lane.b32.xlu2 %v642_v50, %s1261_s8  ;;  %v586_v50 = vunpack.c.l.b16 %v1038_v46  ;;  %v243_v46 = vld [vmem:[%s1343_s30 + $0x40] sm:$0xf] }
  0x4a   : > { %v821_v32 = vsel %vm819_vm0, %v803_v31, 0 }
  0x4b   : > { %v594_v59 = vpack.c.b16 %v586_v50, %v546_v56  ;;  %1106 = vmatpush.bf16.msra.mxu2 %v821_v32  ;;  %1107 = vmatpush.bf16.msra.mxu3 %v821_v32  ;;  %v245_v56 = vld [vmem:[%s1343_s30 + $0x60] sm:$0xf] }
  0x4c   : > { %828 = vmatpush.bf16.msra.mxu0 %v821_v32  ;;  %1105 = vmatpush.bf16.msra.mxu1 %v821_v32 }
  0x4d   : > { %v611_v3 = vshll.u32 %v594_v59, 16  ;;  %v609_v8 = vshrl.u32 %v594_v59, 16 }
  0x4e   : > { %671 = vrot.lane.b32.xlu1 %v656_v54, %s1261_s8  ;;  %669 = vrot.lane.b32.xlu0 %v649_v55, %s1261_s8  ;;  %v545_v54 = vunpack.c.l.b16 %v1029_v47  ;;  %v585_v55 = vunpack.c.l.b16 %v1037_v48 }
  0x4f   : > { %v613_v9 = vrot.slane %v611_v3, 1 }
  0x50   : > { %v593_v60 = vpack.c.b16 %v585_v55, %v545_v54  ;;  %v553_v61 = vpack.c.b16 %v545_v54, %v545_v54 }
  0x51   : > { %385 = vrot.lane.b32.xlu2 %v335_v1, %s1258_s5  ;;  %v555_v1 = vpack.c.b16 %v547_v58, %v547_v58 }
  0x52   : > { %v604_v4 = vshll.u32 %v593_v60, 16  ;;  %v602_v10 = vshrl.u32 %v593_v60, 16 }
  0x54   : > { %v606_v11 = vrot.slane %v604_v4, 1 }
  0x56   : > { %389 = vrot.lane.b32.xlu1 %v349_v6, %s1258_s5  ;;  %387 = vrot.lane.b32.xlu0 %v342_v7, %s1258_s5  ;;  %v588_v6 = vunpack.c.l.b16 %v1040_v0  ;;  %v595_v7 = vpack.c.b16 %v587_v62, %v547_v58  ;;  %v607_v16 = vor.u32 %v606_v11, %v602_v10 }
  0x58   : > { %v596_v12 = vpack.c.b16 %v588_v6, %v548_v5  ;;  %v618_v14 = vshll.u32 %v595_v7, 16  ;;  %v616_v18 = vshrl.u32 %v595_v7, 16 }
  0x59   : > { %391 = vrot.lane.b32.xlu2 %v356_v15, %s1258_s5  ;;  %v614_v15 = vor.u32 %v613_v9, %v609_v8 }
  0x5a   : > { %v625_v17 = vshll.u32 %v596_v12, 16  ;;  %v620_v19 = vrot.slane %v618_v14, 1 }
  0x5c   : > { %v627_v22 = vrot.slane %v625_v17, 1  ;;  %v621_v23 = vor.u32 %v620_v19, %v616_v18  ;;  %v241_v19 = vld [vmem:[%s1343_s30 + $0x20] sm:$0xf] }
  0x5e   : > { %427 = vrot.lane.b32.xlu1 %v418_v20, %s1257_s4  ;;  %425 = vrot.lane.b32.xlu0 %v417_v21, %s1257_s4  ;;  %v623_v21 = vshrl.u32 %v596_v12, 16 }
  0x60   : > { %v628_v24 = vor.u32 %v627_v22, %v623_v21 }
  0x61   : > { %429 = vrot.lane.b32.xlu2 %v419_v33, %s1257_s4  ;;  %v1103_v33 = vld [vmem:[%s1543_s1 + $0x8] sm:$0xff] }
  0x62   : > { %1109 = vmatpush.bf16.msra.mxu2 %v1103_v33  ;;  %1110 = vmatpush.bf16.msra.mxu3 %v1103_v33 }
  0x63   : > { %829 = vmatpush.bf16.msra.mxu0 %v1103_v33  ;;  %1108 = vmatpush.bf16.msra.mxu1 %v1103_v33 }
  0x66   : > { %521 = vrot.lane.b32.xlu1 %v471_v35, %s1259_s6  ;;  %431 = vrot.lane.b32.xlu0 %v420_v36, %s1257_s4 }
  0x67   : > { %1112 = vmatpush.bf16.msra.mxu2 %v1102_v37  ;;  %1113 = vmatpush.bf16.msra.mxu3 %v1102_v37 }
  0x68   : > { %830 = vmatpush.bf16.msra.mxu0 %v1102_v37  ;;  %1111 = vmatpush.bf16.msra.mxu1 %v1102_v37 }
  0x69   : > { %523 = vrot.lane.b32.xlu2 %v478_v45, %s1259_s6 }
  0x6e   : > { %527 = vrot.lane.b32.xlu1 %v492_v51, %s1259_s6  ;;  %525 = vrot.lane.b32.xlu0 %v485_v52, %s1259_s6 }
  0x71   : > { %561 = vrot.lane.b32.xlu2 %v553_v61, %s1260_s7 }
  0x76   : > { %565 = vrot.lane.b32.xlu1 %v555_v1, %s1260_s7  ;;  %563 = vrot.lane.b32.xlu0 %v554_v2, %s1260_s7 }
  0x79   : > { %567 = vrot.lane.b32.xlu2 %v556_v13, %s1260_s7 }
  0x7b   : > { %v434_v20 = vpop.permute.xlu2 %433 }
  0x7e   : > { %659 = vrot.lane.b32.xlu1 %v614_v15, %s1261_s8  ;;  %657 = vrot.lane.b32.xlu0 %v607_v16, %s1261_s8 }
  0x81   : > { %661 = vrot.lane.b32.xlu2 %v621_v23, %s1261_s8 }
  0x83   : > { %v436_v25 = vpop.permute.xlu2 %435 }
  0x86   : > { %663 = vrot.lane.b32.xlu0 %v628_v24, %s1261_s8  ;;  %s888_s8 = sshll.u32 %s220_s29, 4  ;;  %s889_s8 = int_to_ptr.vmem [resolvable:$true] %s888_s8 }
  0x8b   : > { %v530_v26 = vpop.permute.xlu2 %529 }
  0x90   : > { %v440_v29 = vpop.permute.xlu1 %439  ;;  %v438_v30 = vpop.permute.xlu0 %437 }
  0x93   : > { %v536_v34 = vpop.permute.xlu2 %535 }
  0x98   : > { %v398_v35 = vpop.permute.xlu1 %397  ;;  %v394_v36 = vpop.permute.xlu0 %393 }
  0x99   : > { %v688_v50 = vsel %vm673_vm1, %v243_v46, %v394_v36  ;;  %v694_v63 = vsel %vm673_vm1, %v245_v56, %v398_v35 }
  0x9a   : > { %v708_v53 = vsel %vm698_vm2, %v688_v50, %v434_v20  ;;  %v712_v5 = vsel %vm698_vm2, %v694_v63, %v438_v30 }
  0x9b   : > { %v574_v38 = vpop.permute.xlu2 %573  ;;  %v725_v58 = vsel %vm715_vm3, %v708_v53, %v530_v26 }
  0xa0   : > { %v400_v39 = vpop.permute.xlu1 %399  ;;  %v396_v40 = vpop.permute.xlu0 %395 }
  0xa1   : > { %v691_v47 = vsel %vm673_vm1, %v244_v44, %v396_v40  ;;  %v697_v0 = vsel %vm673_vm1, %v246_v57, %v400_v39  ;;  %v239_v40 = vld [vmem:[%s1343_s30] sm:$0xf] }
  0xa2   : > { %v710_v51 = vsel %vm698_vm2, %v691_v47, %v436_v25  ;;  %v714_v4 = vsel %vm698_vm2, %v697_v0, %v440_v29 }
  0xa3   : > { %v668_v41 = vpop.permute.xlu2 %667  ;;  %v731_v8 = vsel %vm715_vm3, %v714_v4, %v536_v34 }
  0xa8   : > { %v534_v42 = vpop.permute.xlu1 %533  ;;  %v532_v43 = vpop.permute.xlu0 %531 }
  0xa9   : > { %v727_v52 = vsel %vm715_vm3, %v710_v51, %v532_v43  ;;  %v729_v7 = vsel %vm715_vm3, %v712_v5, %v534_v42 }
  0xaa   : > { %v746_v10 = vsel %vm732_vm4, %v729_v7, %v574_v38 }
  0xab   : > { %v1443_v45 = vpop.permute.xlu2 %385 }
  0xac   : > { %v676_v47 = vsel %vm673_vm1, %v239_v40, %v1443_v45 }
  0xb0   : > { %v572_v48 = vpop.permute.xlu1 %571  ;;  %v570_v49 = vpop.permute.xlu0 %569 }
  0xb1   : > { %v744_v54 = vsel %vm732_vm4, %v727_v52, %v572_v48  ;;  %v742_v60 = vsel %vm732_vm4, %v725_v58, %v570_v49 }
  0xb2   : > { %v761_v59 = vsel %vm749_vm5, %v744_v54, %v668_v41  ;;  %v240_v41 = vld [vmem:[%s1343_s30 + $0x10] sm:$0xf]  ;;  %s1104_s30 = sshll.u32 %s1247_s15, 6 }
  0xb3   : > { %v392_v55 = vpop.permute.xlu2 %391  ;;  %v784_v2 = vunpack.c.l.b16 %v761_v59  ;;  %s887_s7 = scalar_lea.hbm %s1545_s3, %s1104_s30 }
  0xb4   : > { %v685_v29 = vsel %vm673_vm1, %v242_v28, %v392_v55  ;;  %s890_s9 = sshll.u32 %s887_s7, 4  ;;  %s891_s9 = int_to_ptr.hbm [resolvable:$true] %s890_s9 }
  0xb5   : > { %s1191_s11 = sshra.s32 %s891_s9, 4  ;;  %s1192_s11 = int_to_ptr.hbm [resolvable:$true] %s1191_s11 }
  0xb6   : > { %s1193_s15 = scalar_lea.hbm %s1192_s11, 64  ;;  %p1198_p1 = scmp.lt.s32.totalorder %s1192_s11, %s1545_s3 }
  0xb7   : > { %p1194_p12 = scmp.ne.s32.totalorder %s1192_s11, %s1193_s15  ;;  %p1199_p2 = scmp.lt.s32.totalorder %s1197_s21, %s1193_s15 }
  0xb8   : > { %v666_v61 = vpop.permute.xlu1 %665  ;;  %v576_v62 = vpop.permute.xlu0 %575 }
  0xb9   : > { %v759_v1 = vsel %vm749_vm5, %v742_v60, %v666_v61  ;;  %v748_v11 = vsel %vm732_vm4, %v731_v8, %v576_v62  ;;  %p1195_p13 = pnand %p1194_p12, %p1323_p4  ;;  %p1200_p3 = por %p1199_p2, %p1198_p1 }
  0xba   : > { %v783_v3 = vunpack.c.l.b16 %v759_v1 }
  0xbb   : > { %v430_v9 = vpop.permute.xlu2 %429  ;;  %p1196_p0 = pneg %p1195_p13 }
  0xbc   : > { %v789_v6 = vpack.c.b16 %v784_v2, %v783_v3  ;;  %v1176_v2 = vld [vmem:[%s1544_s2] ss:$0 sm:$0xff] }
  0xbd   : > { %p1201_p5 = pnand %p1200_p3, %p1196_p0 }
  0xbe   : > { %1087 = vmatmul.msk.bf16.vlgmr.msra.gmra.mxu2 %vm806_vm6, %v789_v6 }
  0xc0   : > { %v672_v12 = vpop.permute.xlu1 %671  ;;  %v670_v13 = vpop.permute.xlu0 %669 }
  0xc1   : > { %v765_v14 = vsel %vm749_vm5, %v748_v11, %v672_v12  ;;  %v763_v15 = vsel %vm749_vm5, %v746_v10, %v670_v13 }
  0xc2   : > { %v786_v16 = vunpack.c.l.b16 %v765_v14  ;;  %v785_v17 = vunpack.c.l.b16 %v763_v15 }
  0xc3   : > { %v524_v23 = vpop.permute.xlu2 %523 }
  0xc4   : > { %v790_v18 = vpack.c.b16 %v786_v16, %v785_v17 }
  0xc6   : > { %1088 = vmatmul.msk.bf16.vlgmr.msra.gmra.mxu3 %vm806_vm6, %v790_v18 }
  0xc8   : > { %v390_v20 = vpop.permute.xlu1 %389  ;;  %v388_v21 = vpop.permute.xlu0 %387 }
  0xc9   : > { %v682_v22 = vsel %vm673_vm1, %v241_v19, %v390_v20  ;;  %v679_v48 = vsel %vm673_vm1, %v240_v41, %v388_v21 }
  0xca   : > { %v704_v24 = vsel %vm698_vm2, %v682_v22, %v430_v9 }
  0xcb   : > { %v562_v27 = vpop.permute.xlu2 %561 }
  0xd0   : > { %v428_v25 = vpop.permute.xlu1 %427  ;;  %v426_v26 = vpop.permute.xlu0 %425 }
  0xd1   : > { %v702_v49 = vsel %vm698_vm2, %v679_v48, %v428_v25  ;;  %v700_v50 = vsel %vm698_vm2, %v676_v47, %v426_v26 }
  0xd2   : > { %v719_v52 = vsel %vm715_vm3, %v702_v49, %v524_v23 }
  0xd3   : > { %v568_v33 = vpop.permute.xlu2 %567 }
  0xd8   : > { %v522_v30 = vpop.permute.xlu1 %521  ;;  %v432_v31 = vpop.permute.xlu0 %431 }
  0xd9   : > { %v706_v32 = vsel %vm698_vm2, %v685_v29, %v432_v31  ;;  %v717_v51 = vsel %vm715_vm3, %v700_v50, %v522_v30 }
  0xda   : > { %v734_v53 = vsel %vm732_vm4, %v717_v51, %v562_v27 }
  0xdb   : > { %v662_v39 = vpop.permute.xlu2 %661 }
  0xe0   : > { %v528_v34 = vpop.permute.xlu1 %527  ;;  %v526_v35 = vpop.permute.xlu0 %525 }
  0xe1   : > { %v723_v36 = vsel %vm715_vm3, %v706_v32, %v528_v34  ;;  %v721_v37 = vsel %vm715_vm3, %v704_v24, %v526_v35 }
  0xe2   : > { %v740_v38 = vsel %vm732_vm4, %v723_v36, %v568_v33 }
  0xe8   : > { %v566_v42 = vpop.permute.xlu1 %565  ;;  %v564_v43 = vpop.permute.xlu0 %563 }
  0xe9   : > { %v738_v44 = vsel %vm732_vm4, %v721_v37, %v566_v42  ;;  %v736_v54 = vsel %vm732_vm4, %v719_v52, %v564_v43 }
  0xea   : > { %v755_v46 = vsel %vm749_vm5, %v738_v44, %v662_v39 }
  0xeb   : > { %v781_v63 = vunpack.c.l.b16 %v755_v46 }
  0xf0   : > { %v660_v55 = vpop.permute.xlu1 %659  ;;  %v658_v56 = vpop.permute.xlu0 %657 }
  0xf1   : > { %v753_v45 = vsel %vm749_vm5, %v736_v54, %v660_v55  ;;  %v751_v57 = vsel %vm749_vm5, %v734_v53, %v658_v56 }
  0xf2   : > { %v780_v58 = vunpack.c.l.b16 %v753_v45  ;;  %v779_v59 = vunpack.c.l.b16 %v751_v57 }
  0xf4   : > { %v787_v60 = vpack.c.b16 %v780_v58, %v779_v59 }
  0xf6   : > { %1085 = vmatmul.msk.bf16.vlgmr.msra.gmra.mxu0 %vm806_vm6, %v787_v60 }
  0xf8   : > { %v664_v61 = vpop.permute.xlu0 %663 }
  0xf9   : > { %v757_v62 = vsel %vm749_vm5, %v740_v38, %v664_v61 }
  0xfa   : > { %v782_v0 = vunpack.c.l.b16 %v757_v62 }
  0xfc   : > { %v788_v1 = vpack.c.b16 %v782_v0, %v781_v63 }
  0xfe   : > { %1086 = vmatmul.msk.bf16.vlgmr.msra.gmra.mxu1 %vm806_vm6, %v788_v1 }
 0x141   : > { %v842_v3 = vpop.f32.mrf.mxu2 }
 0x142   : > { %v860_v4 = vadd.f32 %v1176_v2, %v842_v3 }
 0x144   : > { %868 = vst [vmem:[%s220_s29 + $0x20] sm:$0xff] %v860_v4 }
 0x149   : > { %v844_v5 = vpop.f32.mrf.mxu2  ;;  %v847_v6 = vpop.f32.mrf.mxu3 }
 0x14a   : > { %v861_v7 = vadd.f32 %v1176_v2, %v844_v5  ;;  %v862_v8 = vadd.f32 %v1176_v2, %v847_v6 }
 0x14c   : > { %869 = vst [vmem:[%s220_s29 + $0x28] sm:$0xff] %v861_v7 }
 0x14d   : > { %870 = vst [vmem:[%s220_s29 + $0x30] sm:$0xff] %v862_v8 }
 0x151   : > { %v849_v9 = vpop.f32.mrf.mxu3 }
 0x152   : > { %v863_v10 = vadd.f32 %v1176_v2, %v849_v9 }
 0x154   : > { %871 = vst [vmem:[%s220_s29 + $0x38] sm:$0xff] %v863_v10 }
 0x173   : > { %v832_v11 = vpop.f32.mrf.mxu0 }
 0x174   : > { %v856_v12 = vadd.f32 %v1176_v2, %v832_v11 }
 0x176   : > { %864 = vst [vmem:[%s220_s29] sm:$0xff] %v856_v12 }
 0x17b   : > { %v834_v13 = vpop.f32.mrf.mxu0  ;;  %v837_v14 = vpop.f32.mrf.mxu1 }
 0x17c   : > { %v857_v15 = vadd.f32 %v1176_v2, %v834_v13  ;;  %v858_v16 = vadd.f32 %v1176_v2, %v837_v14 }
 0x17e   : > { %865 = vst [vmem:[%s220_s29 + $0x8] sm:$0xff] %v857_v15 }
 0x17f   : > { %866 = vst [vmem:[%s220_s29 + $0x10] sm:$0xff] %v858_v16 }
 0x183   : > { %v839_v17 = vpop.f32.mrf.mxu1 }
 0x184   : > { %v859_v18 = vadd.f32 %v1176_v2, %v839_v17 }
 0x186   : > { %867 = vst [vmem:[%s220_s29 + $0x18] sm:$0xff] %v859_v18 }
 0x187   : > { %1204 = shalt.err (!%p1201_p5)
}
 0x188   : > { %s1262_s23 = smov 128  }
 0x189   : > { %1115 = dma.vmem_to_hbm [thread:$0]  (%p1323_p4), %s889_s8, 1024, %s891_s9, %s873_s10, %s1262_s23, %s1262_s23, %s1258_s5  }
 0x18a PF: > { %p1121_p6 = scmp.ge.s32.totalorder %s1255_s17, 2  ;;  %s905_s28 = sand.u32 1, %s1235_s12  }
 0x18b   : > { %s906_s29 = scalar_lea.sflag [#allocation3], %s905_s28 }
 0x18c   : > { %p1118_p7 = pnand %p1121_p6, %p1330_p8 }
 0x18e   : > { %p1119_p9 = pneg %p1118_p7 }
 0x190   : > { %1230 = dma.done.wait (%p1119_p9), %s906_s29, 1024  }
 0x191   : > { %1232 = vsyncadd (%p1119_p9), %s906_s29, 4294966272  ;;  %s16_s17 = sadd.s32 1, %s1255_s17   ;;  %s1548_s12 = smov %s1239_s13 }
 0x192   : > { %p13_p10 = scmp.ge.s32.totalorder %s16_s17, 4   ;;  %s1549_s13 = smov %s1243_s14 }
 0x193   : > { %s1550_s14 = smov %s1336_s25  ;;  %s1551_s15 = smov %s1251_s16 }
 0x194   : > { %s1552_s16 = smov %s1554_s20  ;;  %15 = sbr.rel (!%p13_p10) target bundleno = 4 (0x4), region = 75 }
 0x199   :  { %912 = vsyncpa [#allocation3], 1 }
 0x19a   :  { %914 = vsyncpa [#allocation3 + $0x1], 1 }

</bundles_post_ra>
